<compile_context>
chip_gen: v5e
topology: v5e:2x2
jax: 0.10.0
libtpu: 0.0.40
codegen_flags: <defaults>
</compile_context>

<pallas_src>
import functools

import jax
import jax.numpy as jnp
from jax import lax
from jax.experimental import pallas as pl
from jax.experimental.pallas import tpu as pltpu

_INV_SQRT2 = 0.7071067811865476
_VMEM_LIMIT = 64 * 1024 * 1024  # fits v5e/v6e (128 MiB) and v7x (64 MiB) physical VMEM


# ---------------------------------------------------------------------------
# Kernels
# ---------------------------------------------------------------------------
def rms_proj_kernel(x_ref, scale_ref, wih_ref, b_ref, xg_ref, *, eps):
    """Fused RMSNorm + LSTM input projection: xg = rmsnorm(x) @ W_ih^T + (b_ih+b_hh)."""
    x = x_ref[...].astype(jnp.float32)                       # (tn, H)
    rms = jnp.sqrt(jnp.mean(x * x, axis=-1, keepdims=True) + eps)
    xn = x / rms * scale_ref[...]
    xg_ref[...] = (jnp.dot(xn.astype(jnp.bfloat16), wih_ref[...],
                           preferred_element_type=jnp.float32)
                   + b_ref[...])                             # (tn, 4H) f32


def lstm_kernel(xg_ref, res_ref, whh_ref, y_ref, h_sc, c_sc, *, t_chunk, hidden):
    """Recurrence over one chunk of timesteps. Only h @ W_hh is on the serial path.

    Grid = (batch_splits["parallel"], time_chunks["arbitrary"]).
    h/c scratch persists across the (sequential) chunk axis and is re-zeroed at
    chunk 0 for every batch split (each core gets its own scratch on v7x).
    """
    H = hidden

    @pl.when(pl.program_id(1) == 0)
    def _():
        h_sc[...] = jnp.zeros_like(h_sc)
        c_sc[...] = jnp.zeros_like(c_sc)

    whh = whh_ref[...]                                       # (H, 4H) bf16, resident
    xg = xg_ref[...]                                         # (Bs, T, 4H) precomputed
    h = h_sc[...]                                            # (Bs, H) f32
    c = c_sc[...]

    outs = []
    for t in range(t_chunk):                                 # static unroll (T small)
        pre = xg[:, t, :] + jnp.dot(h.astype(jnp.bfloat16), whh,
                                    preferred_element_type=jnp.float32)  # (Bs, 4H)
        i_g = jax.nn.sigmoid(pre[:, 0 * H:1 * H])            # gate order i, f, g, o
        f_g = jax.nn.sigmoid(pre[:, 1 * H:2 * H])
        g_g = jnp.tanh(pre[:, 2 * H:3 * H])
        o_g = jax.nn.sigmoid(pre[:, 3 * H:4 * H])
        c = f_g * c + i_g * g_g
        h = o_g * jnp.tanh(c)
        outs.append(h)

    h_sc[...] = h
    c_sc[...] = c
    # fused residual add; single lane-dense store for the whole chunk
    y_ref[...] = (res_ref[...] + jnp.stack(outs, axis=1)).astype(y_ref.dtype)


def mlp_kernel(y_ref, wgu_ref, wd_ref, o_ref, *, inter):
    """out = y + down(gelu(gate(y)) * up(y)); gate/up fused into one (H, 2I) GEMM."""
    y = y_ref[...].astype(jnp.float32)                       # (tn, H)
    gu = jnp.dot(y.astype(jnp.bfloat16), wgu_ref[...],
                 preferred_element_type=jnp.float32)         # (tn, 2I)
    g = gu[:, :inter]
    u = gu[:, inter:]
    act = 0.5 * g * (1.0 + lax.erf(g * _INV_SQRT2))          # exact GELU (torch default)
    hidden = (act * u).astype(jnp.bfloat16)
    o_ref[...] = (y + jnp.dot(hidden, wd_ref[...],
                              preferred_element_type=jnp.float32)).astype(o_ref.dtype)


# ---------------------------------------------------------------------------
# Tiling helpers
# ---------------------------------------------------------------------------
def _row_tile(n_rows):
    # full slab if small, else 512-row tiles (multiple of 8 sublanes, pipelines well)
    return n_rows if n_rows <= 512 else 512


def _time_chunk(seq_len, cap=16):
    # chunk of timesteps unrolled inside the kernel; must divide S and satisfy the
    # (8,128) block rule (divisible by 8 or equal to the full dim).
    if seq_len <= cap:
        return seq_len
    for t in range(cap, 7, -1):
        if seq_len % t == 0 and t % 8 == 0:
            return t
    return seq_len  # irregular S: whole sequence in one chunk


def _batch_splits(batch):
    # v7x has 2 TensorCores per chip: shard the (otherwise serial) recurrence by batch.
    try:
        kind = jax.devices()[0].device_kind.lower()
    except Exception:
        return 1
    if ("v7" in kind or "7x" in kind) and batch % 2 == 0:
        return 2
    return 1


# ---------------------------------------------------------------------------
# Wrapper
# ---------------------------------------------------------------------------
def lstm_decoder_layer(x, params, *, eps=1e-8):
    """x: (B, S, H) float32 (batch_first). Returns (B, S, H)."""
    B, S, H = x.shape
    N = B * S
    H4 = 4 * H
    I2 = params["wgu"].shape[1]
    dtype = x.dtype

    tn = _row_tile(N)
    rowwise_cp = pltpu.CompilerParams(
        dimension_semantics=("parallel",), vmem_limit_bytes=_VMEM_LIMIT)

    # 1) fused RMSNorm + input projection (one big MXU GEMM, off the serial path)
    xg = pl.pallas_call(
        functools.partial(rms_proj_kernel, eps=eps),
        out_shape=jax.ShapeDtypeStruct((N, H4), jnp.float32),
        grid=(pl.cdiv(N, tn),),
        in_specs=[
            pl.BlockSpec((tn, H), lambda i: (i, 0)),
            pl.BlockSpec((1, H), lambda i: (0, 0)),
            pl.BlockSpec((H, H4), lambda i: (0, 0)),
            pl.BlockSpec((1, H4), lambda i: (0, 0)),
        ],
        out_specs=pl.BlockSpec((tn, H4), lambda i: (i, 0)),
        compiler_params=rowwise_cp,
    )(x.reshape(N, H), params["rms_scale"], params["wih"], params["bias"])

    # 2) LSTM recurrence (zero initial state) + residual, batch-first layout
    n_split = _batch_splits(B)
    bs = B // n_split
    t_chunk = _time_chunk(S)
    n_chunk = S // t_chunk

    y = pl.pallas_call(
        functools.partial(lstm_kernel, t_chunk=t_chunk, hidden=H),
        out_shape=jax.ShapeDtypeStruct((B, S, H), dtype),
        grid=(n_split, n_chunk),
        in_specs=[
            pl.BlockSpec((bs, t_chunk, H4), lambda b, c: (b, c, 0)),  # precomputed gates
            pl.BlockSpec((bs, t_chunk, H), lambda b, c: (b, c, 0)),   # residual (= x)
            pl.BlockSpec((H, H4), lambda b, c: (0, 0)),               # W_hh (bf16, resident)
        ],
        out_specs=pl.BlockSpec((bs, t_chunk, H), lambda b, c: (b, c, 0)),
        scratch_shapes=[
            pltpu.VMEM((bs, H), jnp.float32),                         # h
            pltpu.VMEM((bs, H), jnp.float32),                         # c
        ],
        compiler_params=pltpu.CompilerParams(
            dimension_semantics=("parallel", "arbitrary"),            # time is sequential
            vmem_limit_bytes=_VMEM_LIMIT),
    )(xg.reshape(B, S, H4), x, params["whh"])

    # 3) gated-GELU MLP + residual (fused gate/up GEMM), tiled over rows
    out = pl.pallas_call(
        functools.partial(mlp_kernel, inter=I2 // 2),
        out_shape=jax.ShapeDtypeStruct((N, H), dtype),
        grid=(pl.cdiv(N, tn),),
        in_specs=[
            pl.BlockSpec((tn, H), lambda i: (i, 0)),
            pl.BlockSpec((H, I2), lambda i: (0, 0)),
            pl.BlockSpec((I2 // 2, H), lambda i: (0, 0)),
        ],
        out_specs=pl.BlockSpec((tn, H), lambda i: (i, 0)),
        compiler_params=rowwise_cp,
    )(y.reshape(N, H), params["wgu"], params["wd"])
    return out.reshape(B, S, H)


# ---------------------------------------------------------------------------
# Deterministic parameter init (shapes follow the PyTorch module; bf16 weights)
# ---------------------------------------------------------------------------
def init_params(key, hidden_size, d_intermediate):
    H, I = hidden_size, d_intermediate
    ks = jax.random.split(key, 7)
    s_lstm = 1.0 / jnp.sqrt(H)
    s_lin_h = 1.0 / jnp.sqrt(H)
    s_lin_i = 1.0 / jnp.sqrt(I)

    wih = jax.random.uniform(ks[0], (4 * H, H), jnp.float32, -s_lstm, s_lstm)
    whh = jax.random.uniform(ks[1], (4 * H, H), jnp.float32, -s_lstm, s_lstm)
    b_ih = jax.random.uniform(ks[2], (4 * H,), jnp.float32, -s_lstm, s_lstm)
    b_hh = jax.random.uniform(ks[3], (4 * H,), jnp.float32, -s_lstm, s_lstm)
    gate_w = jax.random.uniform(ks[4], (I, H), jnp.float32, -s_lin_h, s_lin_h)
    up_w = jax.random.uniform(ks[5], (I, H), jnp.float32, -s_lin_h, s_lin_h)
    down_w = jax.random.uniform(ks[6], (H, I), jnp.float32, -s_lin_i, s_lin_i)

    return dict(
        rms_scale=jnp.ones((1, H), jnp.float32),
        # fused / pre-transposed bf16 kernel weights (gate column order: i, f, g, o)
        wih=wih.T.astype(jnp.bfloat16),                                   # (H, 4H)
        whh=whh.T.astype(jnp.bfloat16),                                   # (H, 4H)
        bias=(b_ih + b_hh).reshape(1, 4 * H).astype(jnp.float32),         # (1, 4H)
        wgu=jnp.concatenate([gate_w.T, up_w.T], axis=1).astype(jnp.bfloat16),  # (H, 2I)
        wd=down_w.T.astype(jnp.bfloat16),                                 # (I, H)
    )


# ---------------------------------------------------------------------------
# Pure-JAX f32 reference (mirrors the PyTorch forward; same bf16 parameter values)
# ---------------------------------------------------------------------------
def reference_forward(x, params, *, eps=1e-8):
    B, S, H = x.shape
    scale = params["rms_scale"].astype(jnp.float32)
    wih = params["wih"].astype(jnp.float32)
    whh = params["whh"].astype(jnp.float32)
    bias = params["bias"].astype(jnp.float32)
    wgu = params["wgu"].astype(jnp.float32)
    wd = params["wd"].astype(jnp.float32)
    inter = wgu.shape[1] // 2

    rms = jnp.sqrt(jnp.mean(x * x, axis=-1, keepdims=True) + eps)
    xn = x / rms * scale

    def step(carry, x_t):
        h, c = carry
        pre = x_t @ wih + h @ whh + bias
        i, f, g, o = jnp.split(pre, 4, axis=-1)
        i, f, g, o = jax.nn.sigmoid(i), jax.nn.sigmoid(f), jnp.tanh(g), jax.nn.sigmoid(o)
        c = f * c + i * g
        h = o * jnp.tanh(c)
        return (h, c), h

    h0 = jnp.zeros((B, H), jnp.float32)
    c0 = jnp.zeros((B, H), jnp.float32)
    _, hs = lax.scan(step, (h0, c0), jnp.transpose(xn, (1, 0, 2)))
    y = x + jnp.transpose(hs, (1, 0, 2))

    gu = y @ wgu
    g, u = gu[..., :inter], gu[..., inter:]
    act = 0.5 * g * (1.0 + lax.erf(g * _INV_SQRT2))
    return y + (act * u) @ wd


# ---------------------------------------------------------------------------
if __name__ == "__main__":
    B, S, H, I = 2, 8, 32, 64
    key = jax.random.PRNGKey(0)
    k_x, k_p = jax.random.split(key)
    x = jax.random.normal(k_x, (B, S, H), jnp.float32)
    params = init_params(k_p, H, I)

    out = jax.block_until_ready(lstm_decoder_layer(x, params))
    ref = jax.block_until_ready(reference_forward(x, params))

    err = float(jnp.max(jnp.abs(out - ref)))
    mag = float(jnp.max(jnp.abs(ref)))
    # kernel feeds bf16 operands to the MXU (f32 accumulation) while the reference
    # runs pure f32, so allow a few-percent relative tolerance.
    tol = 4e-2 * max(1.0, mag)
    if not (out.shape == (B, S, H) and err < tol):
        raise AssertionError(f"mismatch: shape={out.shape}, max_abs_err={err}, tol={tol}")
    print("KERNEL_OK")
</pallas_src>

<mosaic_0001>
module attributes {stable_mosaic.version = 11 : i64} {
  func.func @rms_proj_kernel(%arg0: i32, %arg1: memref<16x32xf32, #tpu.memory_space<vmem>>, %arg2: memref<1x32xf32, #tpu.memory_space<vmem>>, %arg3: memref<32x128xbf16, #tpu.memory_space<vmem>>, %arg4: memref<1x128xf32, #tpu.memory_space<vmem>>, %arg5: memref<16x128xf32, #tpu.memory_space<vmem>>) attributes {dimension_semantics = [#tpu.dimension_semantics<parallel>], iteration_bounds = array<i64: 1>, scalar_prefetch = 0 : i64, scratch_operands = 0 : i64, tpu.core_type = #tpu.core_type<tc>, window_params = [{transform_indices = @transform_0, window_bounds = array<i64: 16, 32>}, {pipeline_mode = #tpu.pipeline_mode<synchronous>, transform_indices = @transform_1, window_bounds = array<i64: 1, 32>}, {pipeline_mode = #tpu.pipeline_mode<synchronous>, transform_indices = @transform_2, window_bounds = array<i64: 32, 128>}, {pipeline_mode = #tpu.pipeline_mode<synchronous>, transform_indices = @transform_3, window_bounds = array<i64: 1, 128>}, {transform_indices = @transform_4, window_bounds = array<i64: 16, 128>}]} {
    %c0 = arith.constant 0 : index
    %c0_0 = arith.constant 0 : index
    %0 = vector.load %arg1[%c0, %c0_0] : memref<16x32xf32, #tpu.memory_space<vmem>>, vector<16x32xf32>
    %1 = arith.mulf %0, %0 : vector<16x32xf32>
    %cst = arith.constant dense<0.000000e+00> : vector<16xf32>
    %2 = vector.multi_reduction <add>, %1, %cst [1] : vector<16x32xf32> to vector<16xf32>
    %3 = vector.shape_cast %2 : vector<16xf32> to vector<16x1xf32>
    %cst_1 = arith.constant 3.200000e+01 : f32
    %4 = vector.broadcast %cst_1 : f32 to vector<16x1xf32>
    %5 = arith.divf %3, %4 : vector<16x1xf32>
    %cst_2 = arith.constant 9.99999993E-9 : f32
    %6 = vector.broadcast %cst_2 : f32 to vector<16x1xf32>
    %7 = arith.addf %5, %6 : vector<16x1xf32>
    %8 = math.sqrt %7 : vector<16x1xf32>
    %9 = vector.broadcast %8 : vector<16x1xf32> to vector<16x32xf32>
    %10 = arith.divf %0, %9 : vector<16x32xf32>
    %c0_3 = arith.constant 0 : index
    %c0_4 = arith.constant 0 : index
    %11 = vector.load %arg2[%c0_3, %c0_4] : memref<1x32xf32, #tpu.memory_space<vmem>>, vector<1x32xf32>
    %12 = vector.broadcast %11 : vector<1x32xf32> to vector<16x32xf32>
    %13 = arith.mulf %10, %12 : vector<16x32xf32>
    %14 = arith.truncf %13 : vector<16x32xf32> to vector<16x32xbf16>
    %c0_5 = arith.constant 0 : index
    %c0_6 = arith.constant 0 : index
    %15 = vector.load %arg3[%c0_5, %c0_6] : memref<32x128xbf16, #tpu.memory_space<vmem>>, vector<32x128xbf16>
    %cst_7 = arith.constant dense<0.000000e+00> : vector<16x128xf32>
    %16 = tpu.matmul %14, %15, %cst_7 {dimension_numbers = #tpu.dot_dimension_numbers<[1], [0], [0], [1], [0, 0, 1, 1], [], []>} : vector<16x32xbf16>, vector<32x128xbf16>, vector<16x128xf32> -> vector<16x128xf32>
    %c0_8 = arith.constant 0 : index
    %c0_9 = arith.constant 0 : index
    %17 = vector.load %arg4[%c0_8, %c0_9] : memref<1x128xf32, #tpu.memory_space<vmem>>, vector<1x128xf32>
    %18 = vector.broadcast %17 : vector<1x128xf32> to vector<16x128xf32>
    %19 = arith.addf %16, %18 : vector<16x128xf32>
    %c0_10 = arith.constant 0 : index
    %c0_11 = arith.constant 0 : index
    %20 = vector.load %arg5[%c0_10, %c0_11] : memref<16x128xf32, #tpu.memory_space<vmem>>, vector<16x128xf32>
    tpu.vector_store %arg5[%c0_10, %c0_11], %19 {strides = array<i32>} : memref<16x128xf32, #tpu.memory_space<vmem>>, vector<16x128xf32>,
    return
  }
  func.func @transform_0(%arg0: i32) -> (i32, i32) {
    %c0_i32 = arith.constant 0 : i32
    %c0_i32_0 = arith.constant 0 : i32
    return %arg0, %c0_i32 : i32, i32
  }
  func.func @transform_1(%arg0: i32) -> (i32, i32) {
    %c0_i32 = arith.constant 0 : i32
    %c0_i32_0 = arith.constant 0 : i32
    %c0_i32_1 = arith.constant 0 : i32
    return %c0_i32, %c0_i32_0 : i32, i32
  }
  func.func @transform_2(%arg0: i32) -> (i32, i32) {
    %c0_i32 = arith.constant 0 : i32
    %c0_i32_0 = arith.constant 0 : i32
    %c0_i32_1 = arith.constant 0 : i32
    return %c0_i32, %c0_i32_0 : i32, i32
  }
  func.func @transform_3(%arg0: i32) -> (i32, i32) {
    %c0_i32 = arith.constant 0 : i32
    %c0_i32_0 = arith.constant 0 : i32
    %c0_i32_1 = arith.constant 0 : i32
    return %c0_i32, %c0_i32_0 : i32, i32
  }
  func.func @transform_4(%arg0: i32) -> (i32, i32) {
    %c0_i32 = arith.constant 0 : i32
    %c0_i32_0 = arith.constant 0 : i32
    return %arg0, %c0_i32 : i32, i32
  }
}

</mosaic_0001>

<bundles_post_ra>
// kernel: tpu_custom_call.1
= control target key start
LH: loop header
LB: loop body
LE: loop exit
PB: predicated region body
PF: predicated region fallthrough
CT: control target
= control target key end

     0   :  { %9 = vsyncpa [#allocation3], 0  ;;  %s408_s0 = inlined_call_operand.hbm [shape: f32[16,32], index: 0, kind: input, shape index: {}]   ;;  %s409_s1 = inlined_call_operand.hbm [shape: f32[1,32], index: 1, kind: input, shape index: {}]   ;;  %s410_s2 = inlined_call_operand.hbm [shape: bf16[32,128], index: 2, kind: input, shape index: {}]   ;;  %s411_s3 = inlined_call_operand.vmem [shape: f32[1,128], index: 3, kind: input, shape index: {}]   ;;  %s412_s4 = inlined_call_operand.hbm [shape: f32[16,128], index: 4, kind: output, shape index: {}]  }
   0x1   :  { %10 = vsyncpa [#allocation6], 0  ;;  %s30_s17 = sshll.u32 %s409_s1, 4  ;;  %s31_s17 = int_to_ptr.hbm [resolvable:$true] %s30_s17 }
   0x2   :  { %11 = vsyncpa [#allocation4], 0  ;;  %s340_s18 = smov [#allocation5]   ;;  %s16_s22 = sshll.u32 %s408_s0, 4  ;;  %s17_s22 = int_to_ptr.hbm [resolvable:$true] %s16_s22 }
   0x3   :  { %s32_s19 = sshll.u32 %s340_s18, 4  ;;  %s341_s23 = smov [#allocation2]   ;;  %s33_s19 = int_to_ptr.vmem [resolvable:$true] %s32_s19 }
   0x4   :  { %35 = dma.hbm_to_vmem [thread:$0]  %s31_s17, 16, %s33_s19, [#allocation6]  }
   0x5   :  { %s18_s24 = sshll.u32 %s341_s23, 4  ;;  %s342_s25 = smov 128   ;;  %s19_s24 = int_to_ptr.vmem [resolvable:$true] %s18_s24 }
   0x6   :  { %s343_s26 = smov 8   ;;  %s40_s28 = sshll.u32 %s410_s2, 4  ;;  %s41_s28 = int_to_ptr.hbm [resolvable:$true] %s40_s28 }
   0x7   :  { %24 = dma.hbm_to_vmem [thread:$0]  %s17_s22, 256, %s19_s24, [#allocation3], %s342_s25, %s342_s25, %s343_s26  }
   0x8   :  { %s344_s29 = smov [#allocation7]   ;;  %s345_s0 = smov 64  }
   0x9   :  { %s42_s30 = sshll.u32 %s344_s29, 4  ;;  %s346_s5 = smov 4   ;;  %s43_s30 = int_to_ptr.vmem [resolvable:$true] %s42_s30 }
   0xa   :  { %48 = dma.hbm_to_vmem [thread:$0]  %s41_s28, 256, %s43_s30, [#allocation6], %s345_s0, %s345_s0, %s346_s5  }
   0xb   :  { %334 = dma.done.wait [#allocation3], 256  }
   0xc   :  { %335 = vsyncadd [#allocation3], 4294967040 }
   0xd   :  { %336 = dma.done.wait [#allocation6], 272  }
   0xe   :  { %337 = vsyncadd [#allocation6], 4294967024  ;;  %v386_v0 = vld [vmem:[#allocation2] sm:$0xff]  ;;  %vm68_vm0 = vcmask 261120   ;;  %v390_v2 = vld [vmem:[#allocation2 + $0x8] sm:$0xff]  ;;  %v347_v6 = vmov 32.0  }
   0xf   :  { %v66_v1 = vmul.f32 %v386_v0, %v386_v0  ;;  %v67_v4 = vmul.f32 %v390_v2, %v390_v2  ;;  %228 = vrcp.f32 %v347_v6  ;;  %v216_v12 = vld [vmem:[#allocation7 + $0x8] sm:$0xff]  ;;  %v215_v13 = vld [vmem:[#allocation7] sm:$0xff]  ;;  %v226_v61 = vld [vmem:[#allocation5] ss:$0 sm:$0xff]  ;;  %s348_s7 = smov [#allocation8]   ;;  %s192_s11 = sshll.u32 %s412_s4, 4  ;;  %s193_s11 = int_to_ptr.hbm [resolvable:$true] %s192_s11 }
  0x10   :  { %176 = vmatpush.bf16.msra.mxu0 %v216_v12  ;;  %s190_s8 = sshll.u32 %s348_s7, 4  ;;  %s191_s8 = int_to_ptr.vmem [resolvable:$true] %s190_s8 }
  0x11   :  { %v69_v3 = vsel %vm68_vm0, %v66_v1, 0.0  ;;  %v72_v5 = vsel %vm68_vm0, %v67_v4, 0.0 }
  0x12   :  { %70 = vadd.xlane.f32.xlu0 %v69_v3 }
  0x14   :  { %177 = vmatpush.bf16.msra.mxu0 %v215_v13 }
  0x15   :  { %v229_v7 = vpop.eup %228 }
  0x16   :  { %v76_v8 = vmul.f32 32.0, %v229_v7  ;;  %vm80_vm1 = vweird.f32 %v229_v7 }
  0x18   :  { %v77_v9 = vsub.f32 1.0, %v76_v8 }
  0x1a   :  { %73 = vadd.xlane.f32.xlu0 %v72_v5  ;;  %v78_v10 = vmul.f32 %v229_v7, %v77_v9  ;;  %v227_v5 = vld [vmem:[%s411_s3] ss:$0 sm:$0xff] }
  0x1c   :  { %v79_v11 = vadd.f32 %v229_v7, %v78_v10 }
  0x1e   :  { %v81_v14 = vsel %vm80_vm1, %v229_v7, %v79_v11 }
  0x85   :  { %v71_v15 = vpop.xlane.xlu0 %70 }
  0x86   :  { %v82_v16 = vmul.f32 %v81_v14, %v71_v15 }
  0x88   :  { %v84_v17 = vadd.f32 1e-08, %v82_v16 }
  0x8a   :  { %230 = vrsqrt.f32 %v84_v17  ;;  %vm93_vm2 = vcmp.eq.f32.partialorder %v84_v17, inf  ;;  %v96_v31 = vand.u32 2147483648, %v84_v17  ;;  %vm95_vm3 = vcmp.eq.f32.partialorder %v84_v17, 0.0 }
  0x8d   :  { %v74_v18 = vpop.xlane.xlu0 %73 }
  0x8e   :  { %v83_v19 = vmul.f32 %v81_v14, %v74_v18 }
  0x90   :  { %v231_v20 = vpop.eup %230  ;;  %v85_v21 = vadd.f32 1e-08, %v83_v19 }
  0x91   :  { %v87_v22 = vmul.f32 %v231_v20, %v84_v17 }
  0x92   :  { %232 = vrsqrt.f32 %v85_v21  ;;  %vm105_vm4 = vcmp.eq.f32.partialorder %v85_v21, inf  ;;  %v108_v38 = vand.u32 2147483648, %v85_v21  ;;  %vm107_vm5 = vcmp.eq.f32.partialorder %v85_v21, 0.0 }
  0x93   :  { %v88_v23 = vmul.f32 %v231_v20, %v87_v22 }
  0x95   :  { %v89_v24 = vmul.f32 0.5, %v88_v23 }
  0x97   :  { %v90_v25 = vsub.f32 1.5, %v89_v24 }
  0x98   :  { %v233_v26 = vpop.eup %232 }
  0x99   :  { %v99_v27 = vmul.f32 %v233_v26, %v85_v21  ;;  %v91_v28 = vmul.f32 %v231_v20, %v90_v25 }
  0x9b   :  { %v100_v29 = vmul.f32 %v233_v26, %v99_v27  ;;  %v92_v30 = vmul.f32 %v91_v28, %v84_v17 }
  0x9d   :  { %v101_v32 = vmul.f32 0.5, %v100_v29  ;;  %v94_v33 = vsel %vm93_vm2, %v84_v17, %v92_v30 }
  0x9e   :  { %v97_v34 = vsel %vm95_vm3, %v96_v31, %v94_v33 }
  0x9f   :  { %v102_v35 = vsub.f32 1.5, %v101_v32  ;;  %234 = vrcp.f32 %v97_v34  ;;  %v121_v47 = vand.u32 2147483648, %v97_v34  ;;  %vm115_vm7 = vweird.f32 %v97_v34 }
  0xa0   :  { %v119_v48 = vand.u32 2147483647, %v97_v34 }
  0xa1   :  { %v103_v36 = vmul.f32 %v233_v26, %v102_v35  ;;  %v122_v52 = vor.u32 1.1754944e-38, %v121_v47 }
  0xa2   :  { %vm120_vm9 = vcmp.eq.f32.partialorder %v119_v48, 8.507059e+37 }
  0xa3   :  { %v104_v37 = vmul.f32 %v103_v36, %v85_v21 }
  0xa5   :  { %v235_v39 = vpop.eup %234  ;;  %v106_v40 = vsel %vm105_vm4, %v85_v21, %v104_v37 }
  0xa6   :  { %v109_v41 = vsel %vm107_vm5, %v108_v38, %v106_v40  ;;  %v111_v42 = vmul.f32 %v235_v39, %v97_v34  ;;  %vm116_vm6 = vweird.f32 %v235_v39 }
  0xa7   :  { %236 = vrcp.f32 %v109_v41  ;;  %vm117_vm8 = vmor %vm115_vm7, %vm116_vm6  ;;  %v136_v53 = vand.u32 2147483648, %v109_v41  ;;  %v134_v55 = vand.u32 2147483647, %v109_v41  ;;  %vm130_vm11 = vweird.f32 %v109_v41 }
  0xa8   :  { %v112_v43 = vsub.f32 1.0, %v111_v42 }
  0xa9   :  { %v137_v58 = vor.u32 1.1754944e-38, %v136_v53  ;;  %vm135_vm13 = vcmp.eq.f32.partialorder %v134_v55, 8.507059e+37 }
  0xaa   :  { %v113_v44 = vmul.f32 %v235_v39, %v112_v43 }
  0xac   :  { %v114_v45 = vadd.f32 %v235_v39, %v113_v44 }
  0xad   :  { %v237_v46 = vpop.eup %236 }
  0xae   :  { %v126_v49 = vmul.f32 %v237_v46, %v109_v41  ;;  %v118_v50 = vsel %vm117_vm8, %v235_v39, %v114_v45  ;;  %vm131_vm10 = vweird.f32 %v237_v46 }
  0xaf   :  { %v123_v56 = vsel %vm120_vm9, %v122_v52, %v118_v50  ;;  %vm132_vm12 = vmor %vm130_vm11, %vm131_vm10 }
  0xb0   :  { %v127_v51 = vsub.f32 1.0, %v126_v49  ;;  %v124_v59 = vmul.f32 %v123_v56, %v386_v0 }
  0xb2   :  { %v128_v54 = vmul.f32 %v237_v46, %v127_v51  ;;  %v144_v1 = vmul.f32 %v226_v61, %v124_v59 }
  0xb4   :  { %v129_v57 = vadd.f32 %v237_v46, %v128_v54 }
  0xb6   :  { %v133_v60 = vsel %vm132_vm12, %v237_v46, %v129_v57 }
  0xb7   :  { %v138_v62 = vsel %vm135_vm13, %v137_v58, %v133_v60 }
  0xb8   :  { %v139_v63 = vmul.f32 %v138_v62, %v390_v2 }
  0xba   :  { %v145_v3 = vmul.f32 %v226_v61, %v139_v63 }
  0xbc   :  { %v146_v4 = vpack.c.bf16 %v145_v3, %v144_v1 }
  0xbe   :  { %214 = vmatmul.msk.bf16.vlgmr.msra.gmra.mxu0 %vm68_vm0, %v146_v4 }
 0x13b   :  { %v179_v6 = vpop.f32.mrf.mxu0 }
 0x13c   :  { %v180_v7 = vadd.f32 %v227_v5, %v179_v6 }
 0x13e   :  { %184 = vst [vmem:[#allocation8] sm:$0xff] %v180_v7 }
 0x143   :  { %v181_v0 = vpop.f32.mrf.mxu0 }
 0x144   :  { %v182_v2 = vadd.f32 %v227_v5, %v181_v0 }
 0x146   :  { %185 = vst [vmem:[#allocation8 + $0x8] sm:$0xff] %v182_v2 }
 0x147   :  { %198 = dma.vmem_to_hbm [thread:$0]  %s191_s8, 256, %s193_s11, [#allocation4], %s342_s25, %s342_s25, %s343_s26  }
 0x148   :  { %338 = dma.done.wait [#allocation4], 256  }
 0x149   :  { %339 = vsyncadd [#allocation4], 4294967040 }
 0x14a   :  { %203 = vsyncpa [#allocation3], 1 }
 0x14b   :  { %204 = vsyncpa [#allocation6], 1 }
 0x14c   :  { %205 = vsyncpa [#allocation4], 1 }

</bundles_post_ra>
